<compile_context>
chip_gen: v6e
topology: v6e:2x2x1
jax: 0.10.0
libtpu: 0.0.40
codegen_flags: <defaults>
</compile_context>

<pallas_src>
from functools import partial

import numpy as np
import jax
import jax.numpy as jnp
from jax import lax
from jax.experimental import pallas as pl
from jax.experimental.pallas import tpu as pltpu

# --- AddMarginProduct / optimizer hyper-parameters (PyTorch defaults) ---
SCALE = 30.0
MARGIN = 0.4
LR = 0.01
MOMENTUM = 0.9
DAMPENING = 0.9
WEIGHT_DECAY = 0.001
EPS = 1e-12          # F.normalize eps
EPS2 = EPS * EPS     # x * rsqrt(max(|x|^2, eps^2)) == x / max(|x|, eps)


def _l2_normalize(x):
    return x * lax.rsqrt(jnp.maximum(jnp.sum(x * x, axis=-1, keepdims=True), EPS2))


# ----------------------------------------------------------------------
# Single fused kernel: pool -> 100-epoch SGD fine-tune -> score -> rewards.
#   Inputs (VMEM): support_xf (S,C,HW), query_xf (Q,C,HW), support one-hot
#     (S,K), w0 (K,C), query_y (Q,1).
#   Inputs (SMEM): flat batch indices (T*B,), valid counts (T,), 1/count (T,).
#   Output (VMEM): rewards (Q,1) int32.
#   Scratch (VMEM): pooled support (S,C) and query (Q,C) features.
# ----------------------------------------------------------------------
def _negcos_kernel(sxf_ref, qxf_ref, syoh_ref, w0_ref, qy_ref,
                   idx_ref, cnt_ref, inv_ref,
                   out_ref,
                   supf_ref, qryf_ref,
                   *, num_steps, batch_size):
    s, c, hw = sxf_ref.shape
    q = qxf_ref.shape[0]
    k = syoh_ref.shape[1]
    bsz = batch_size

    # ---- adaptive_avg_pool2d(., 1): per-sample (1,HW)@(C,HW)^T matvec ----
    # Keeps C on the lane axis with no host transpose; MXU is idle so these
    # one-time matvecs are effectively free.
    ones_row = jnp.full((1, hw), 1.0 / hw, dtype=jnp.float32)
    for i in range(s):
        supf_ref[pl.ds(i, 1), :] = lax.dot_general(
            ones_row, sxf_ref[i], (((1,), (1,)), ((), ())),
            preferred_element_type=jnp.float32)
    for i in range(q):
        qryf_ref[pl.ds(i, 1), :] = lax.dot_general(
            ones_row, qxf_ref[i], (((1,), (1,)), ((), ())),
            preferred_element_type=jnp.float32)

    sup_f = supf_ref[...]          # (S, C)  pooled support features
    sy_oh = syoh_ref[...]          # (S, K)  one-hot of support labels

    row_bs = lax.broadcasted_iota(jnp.int32, (bsz, s), 0)
    col_bs = lax.broadcasted_iota(jnp.int32, (bsz, s), 1)
    row_bk = lax.broadcasted_iota(jnp.int32, (bsz, k), 0)

    # ---- fused fine-tune loop: one lax.fori_loop, zero grid overhead ----
    def sgd_step(t, carry):
        w, buf = carry

        # Mini-batch gather as a one-hot-select matmul (indices from SMEM).
        sel_idx = jnp.zeros((bsz, s), jnp.int32)
        for b in range(bsz):
            sel_idx = jnp.where(row_bs == b, idx_ref[t * bsz + b], sel_idx)
        sel = (col_bs == sel_idx).astype(jnp.float32)                    # (B, S)

        f = jnp.dot(sel, sup_f, preferred_element_type=jnp.float32)      # (B, C)
        oh = jnp.dot(sel, sy_oh, preferred_element_type=jnp.float32)     # (B, K)

        # Per-row gradient scale: 1/true_count for valid rows, exactly 0.0
        # for padded rows (pad rows re-run sample 0 but contribute no grad).
        nv = cnt_ref[t]
        gscale = jnp.where(row_bk < nv, inv_ref[t], 0.0)                 # (B, K)

        # AddMarginProduct forward (features were detached in the reference).
        f_hat = _l2_normalize(f)
        w_inv = lax.rsqrt(jnp.maximum(jnp.sum(w * w, axis=-1, keepdims=True), EPS2))
        w_hat = w * w_inv
        cos = lax.dot_general(f_hat, w_hat, (((1,), (1,)), ((), ())),
                              preferred_element_type=jnp.float32)        # (B, K)
        logits = SCALE * (cos - MARGIN * oh)
        logits = logits - jnp.max(logits, axis=-1, keepdims=True)
        e = jnp.exp(logits)
        p = e / jnp.sum(e, axis=-1, keepdims=True)

        # Mean-CE backward w.r.t. cosine, then through F.normalize(weight).
        g_cos = SCALE * (p - oh) * gscale                                # (B, K)
        dw_hat = lax.dot_general(g_cos, f_hat, (((0,), (0,)), ((), ())),
                                 preferred_element_type=jnp.float32)     # (K, C)
        proj = jnp.sum(dw_hat * w_hat, axis=-1, keepdims=True)
        grad = (dw_hat - w_hat * proj) * w_inv

        # PyTorch SGD(lr=0.01, momentum=0.9, dampening=0.9, weight_decay=0.001):
        # first step buf = d_p, afterwards buf = mom*buf + (1-damp)*d_p.
        d_p = grad + WEIGHT_DECAY * w
        buf = jnp.where(t == 0, d_p, MOMENTUM * buf + (1.0 - DAMPENING) * d_p)
        w = w - LR * buf
        return w, buf

    w0 = w0_ref[...]
    w_final, _ = lax.fori_loop(0, num_steps, sgd_step, (w0, jnp.zeros_like(w0)))

    # ---- query scoring + argmax + reward, fused (w already on-chip) ------
    q_hat = _l2_normalize(qryf_ref[...])                                  # (Q, C)
    w_hat = _l2_normalize(w_final)                                        # (K, C)
    scores = SCALE * lax.dot_general(q_hat, w_hat, (((1,), (1,)), ((), ())),
                                     preferred_element_type=jnp.float32)  # (Q, K)
    mx = jnp.max(scores, axis=-1, keepdims=True)
    col_qk = lax.broadcasted_iota(jnp.int32, (q, k), 1).astype(jnp.float32)
    # torch.max tie-breaking: first index attaining the max.
    pred = jnp.min(jnp.where(scores == mx, col_qk, float(k)),
                   axis=-1, keepdims=True)                                # (Q, 1)
    out_ref[...] = (pred.astype(jnp.int32) == qy_ref[...]).astype(jnp.int32)


# ----------------------------------------------------------------------
# Device wrapper: one jit, one pallas_call, one transfer back.
# ----------------------------------------------------------------------
@partial(jax.jit, static_argnames=("n_way", "batch_size"))
def _device_forward(support_xf, support_y, query_xf, query_y, weight_key,
                    idx_flat, cnt_tab, inv_tab, *, n_way, batch_size):
    _, s, c, h, w = support_xf.shape
    q = query_xf.shape[1]
    hw = h * w

    sxf3 = support_xf.reshape(s, c, hw).astype(jnp.float32)   # free reshape, no transpose
    qxf3 = query_xf.reshape(q, c, hw).astype(jnp.float32)
    sy_oh = jax.nn.one_hot(support_y.reshape(s), n_way, dtype=jnp.float32)   # (S, K)
    qy2 = query_y.reshape(q, 1).astype(jnp.int32)

    # kaiming_uniform_(a=sqrt(5)) on (n_way, C) -> U(-1/sqrt(C), 1/sqrt(C))
    bound = 1.0 / np.sqrt(c)
    w0 = jax.random.uniform(weight_key, (n_way, c), jnp.float32, -bound, bound)

    num_steps = int(cnt_tab.shape[0])
    kernel = partial(_negcos_kernel, num_steps=num_steps, batch_size=batch_size)

    vmem = pl.BlockSpec(memory_space=pltpu.MemorySpace.VMEM)
    smem = pl.BlockSpec(memory_space=pltpu.MemorySpace.SMEM)

    rewards = pl.pallas_call(
        kernel,
        out_shape=jax.ShapeDtypeStruct((q, 1), jnp.int32),
        in_specs=[vmem, vmem, vmem, vmem, vmem, smem, smem, smem],
        out_specs=vmem,
        scratch_shapes=[pltpu.VMEM((s, c), jnp.float32),    # pooled support
                        pltpu.VMEM((q, c), jnp.float32)],   # pooled query
    )(sxf3, qxf3, sy_oh, w0, qy2, idx_flat, cnt_tab, inv_tab)
    return rewards[:, 0]


# ----------------------------------------------------------------------
# NegativeCosine.forward
# ----------------------------------------------------------------------
def negative_cosine_forward(support_xf, support_y, query_xf, query_y,
                            n_way, k_shot, weight_key,
                            epochs=100, batch_size=4):
    b, q, c, h, w = query_xf.shape
    assert b == 1
    s = support_xf.shape[1]
    assert s == n_way * k_shot
    assert support_xf.shape[0] == 1

    # Host-side batch schedule (matches the reference's np.random.permutation).
    # Padded rows reuse index 0 and are masked to an exact 0.0 grad scale
    # in-kernel via the per-step valid count.
    idx_rows, counts = [], []
    for _epoch in range(epochs):
        perm = np.random.permutation(s)
        for i in range(0, s, batch_size):
            sel = perm[i:min(i + batch_size, s)]
            nv = len(sel)
            row = np.zeros(batch_size, np.int32)
            row[:nv] = sel
            idx_rows.append(row)
            counts.append(nv)
    idx_flat = jnp.asarray(np.concatenate(idx_rows).astype(np.int32))   # (T*B,)
    cnt_tab = jnp.asarray(np.asarray(counts, np.int32))                 # (T,)
    inv_tab = jnp.asarray(1.0 / np.asarray(counts, np.float32))         # (T,)

    rewards = _device_forward(support_xf, support_y, query_xf, query_y,
                              weight_key, idx_flat, cnt_tab, inv_tab,
                              n_way=n_way, batch_size=batch_size)
    rewards = np.asarray(jax.block_until_ready(rewards))
    return [int(r) for r in rewards]


if __name__ == "__main__":
    np.random.seed(0)          # deterministic shuffle schedule for the demo
    key = jax.random.PRNGKey(0)
    n_way, k_shot, q_per_class = 5, 1, 2
    C, H, W = 32, 6, 6
    S = n_way * k_shot
    Q = n_way * q_per_class

    k_sup, k_qry, k_w = jax.random.split(key, 3)
    support_xf = jax.random.normal(k_sup, (1, S, C, H, W), jnp.float32)
    query_xf = jax.random.normal(k_qry, (1, Q, C, H, W), jnp.float32)
    support_y = jnp.repeat(jnp.arange(n_way, dtype=jnp.int32), k_shot).reshape(1, S)
    query_y = jnp.repeat(jnp.arange(n_way, dtype=jnp.int32), q_per_class).reshape(1, Q)

    # TODO(synk): weight init / shuffle use JAX+NumPy RNGs, so results cannot
    # bit-match PyTorch's torch RNG; the math (AddMarginProduct, mean-CE grad,
    # PyTorch-SGD update) is identical.
    rewards = negative_cosine_forward(support_xf, support_y, query_xf, query_y,
                                      n_way, k_shot, k_w)
    assert len(rewards) == Q and all(r in (0, 1) for r in rewards)
    print("KERNEL_OK")
</pallas_src>

<mosaic_0001>
module attributes {stable_mosaic.version = 11 : i64} {
  func.func @_negcos_kernel(%arg0: memref<5x32x36xf32, #tpu.memory_space<vmem>>, %arg1: memref<10x32x36xf32, #tpu.memory_space<vmem>>, %arg2: memref<5x5xf32, #tpu.memory_space<vmem>>, %arg3: memref<5x32xf32, #tpu.memory_space<vmem>>, %arg4: memref<10x1xi32, #tpu.memory_space<vmem>>, %arg5: memref<800xi32, #tpu.memory_space<smem>>, %arg6: memref<200xi32, #tpu.memory_space<smem>>, %arg7: memref<200xf32, #tpu.memory_space<smem>>, %arg8: memref<10x1xi32, #tpu.memory_space<vmem>>, %arg9: memref<5x32xf32, #tpu.memory_space<vmem>>, %arg10: memref<10x32xf32, #tpu.memory_space<vmem>>) attributes {dimension_semantics = [], scalar_prefetch = 0 : i64, scratch_operands = 2 : i64, tpu.core_type = #tpu.core_type<tc>} {
    %cst = arith.constant 0.027777778 : f32
    %0 = vector.broadcast %cst : f32 to vector<1x36xf32>
    %c0 = arith.constant 0 : index
    %c0_0 = arith.constant 0 : index
    %c0_1 = arith.constant 0 : index
    %1 = vector.load %arg0[%c0, %c0_0, %c0_1] : memref<5x32x36xf32, #tpu.memory_space<vmem>>, vector<1x32x36xf32>
    %2 = vector.shape_cast %1 : vector<1x32x36xf32> to vector<32x36xf32>
    %cst_2 = arith.constant dense<0.000000e+00> : vector<1x32xf32>
    %3 = tpu.matmul %0, %2, %cst_2 {dimension_numbers = #tpu.dot_dimension_numbers<[1], [1], [0], [0], [0, 0, 1, 0], [], []>} : vector<1x36xf32>, vector<32x36xf32>, vector<1x32xf32> -> vector<1x32xf32>
    %c0_3 = arith.constant 0 : index
    %c0_4 = arith.constant 0 : index
    %4 = vector.load %arg9[%c0_3, %c0_4] : memref<5x32xf32, #tpu.memory_space<vmem>>, vector<1x32xf32>
    tpu.vector_store %arg9[%c0_3, %c0_4], %3 {strides = array<i32>} : memref<5x32xf32, #tpu.memory_space<vmem>>, vector<1x32xf32>,
    %c1 = arith.constant 1 : index
    %c0_5 = arith.constant 0 : index
    %c0_6 = arith.constant 0 : index
    %5 = vector.load %arg0[%c1, %c0_5, %c0_6] : memref<5x32x36xf32, #tpu.memory_space<vmem>>, vector<1x32x36xf32>
    %6 = vector.shape_cast %5 : vector<1x32x36xf32> to vector<32x36xf32>
    %cst_7 = arith.constant dense<0.000000e+00> : vector<1x32xf32>
    %7 = tpu.matmul %0, %6, %cst_7 {dimension_numbers = #tpu.dot_dimension_numbers<[1], [1], [0], [0], [0, 0, 1, 0], [], []>} : vector<1x36xf32>, vector<32x36xf32>, vector<1x32xf32> -> vector<1x32xf32>
    %c1_8 = arith.constant 1 : index
    %c0_9 = arith.constant 0 : index
    %8 = vector.load %arg9[%c1_8, %c0_9] : memref<5x32xf32, #tpu.memory_space<vmem>>, vector<1x32xf32>
    tpu.vector_store %arg9[%c1_8, %c0_9], %7 {strides = array<i32>} : memref<5x32xf32, #tpu.memory_space<vmem>>, vector<1x32xf32>,
    %c2 = arith.constant 2 : index
    %c0_10 = arith.constant 0 : index
    %c0_11 = arith.constant 0 : index
    %9 = vector.load %arg0[%c2, %c0_10, %c0_11] : memref<5x32x36xf32, #tpu.memory_space<vmem>>, vector<1x32x36xf32>
    %10 = vector.shape_cast %9 : vector<1x32x36xf32> to vector<32x36xf32>
    %cst_12 = arith.constant dense<0.000000e+00> : vector<1x32xf32>
    %11 = tpu.matmul %0, %10, %cst_12 {dimension_numbers = #tpu.dot_dimension_numbers<[1], [1], [0], [0], [0, 0, 1, 0], [], []>} : vector<1x36xf32>, vector<32x36xf32>, vector<1x32xf32> -> vector<1x32xf32>
    %c2_13 = arith.constant 2 : index
    %c0_14 = arith.constant 0 : index
    %12 = vector.load %arg9[%c2_13, %c0_14] : memref<5x32xf32, #tpu.memory_space<vmem>>, vector<1x32xf32>
    tpu.vector_store %arg9[%c2_13, %c0_14], %11 {strides = array<i32>} : memref<5x32xf32, #tpu.memory_space<vmem>>, vector<1x32xf32>,
    %c3 = arith.constant 3 : index
    %c0_15 = arith.constant 0 : index
    %c0_16 = arith.constant 0 : index
    %13 = vector.load %arg0[%c3, %c0_15, %c0_16] : memref<5x32x36xf32, #tpu.memory_space<vmem>>, vector<1x32x36xf32>
    %14 = vector.shape_cast %13 : vector<1x32x36xf32> to vector<32x36xf32>
    %cst_17 = arith.constant dense<0.000000e+00> : vector<1x32xf32>
    %15 = tpu.matmul %0, %14, %cst_17 {dimension_numbers = #tpu.dot_dimension_numbers<[1], [1], [0], [0], [0, 0, 1, 0], [], []>} : vector<1x36xf32>, vector<32x36xf32>, vector<1x32xf32> -> vector<1x32xf32>
    %c3_18 = arith.constant 3 : index
    %c0_19 = arith.constant 0 : index
    %16 = vector.load %arg9[%c3_18, %c0_19] : memref<5x32xf32, #tpu.memory_space<vmem>>, vector<1x32xf32>
    tpu.vector_store %arg9[%c3_18, %c0_19], %15 {strides = array<i32>} : memref<5x32xf32, #tpu.memory_space<vmem>>, vector<1x32xf32>,
    %c4 = arith.constant 4 : index
    %c0_20 = arith.constant 0 : index
    %c0_21 = arith.constant 0 : index
    %17 = vector.load %arg0[%c4, %c0_20, %c0_21] : memref<5x32x36xf32, #tpu.memory_space<vmem>>, vector<1x32x36xf32>
    %18 = vector.shape_cast %17 : vector<1x32x36xf32> to vector<32x36xf32>
    %cst_22 = arith.constant dense<0.000000e+00> : vector<1x32xf32>
    %19 = tpu.matmul %0, %18, %cst_22 {dimension_numbers = #tpu.dot_dimension_numbers<[1], [1], [0], [0], [0, 0, 1, 0], [], []>} : vector<1x36xf32>, vector<32x36xf32>, vector<1x32xf32> -> vector<1x32xf32>
    %c4_23 = arith.constant 4 : index
    %c0_24 = arith.constant 0 : index
    %20 = vector.load %arg9[%c4_23, %c0_24] : memref<5x32xf32, #tpu.memory_space<vmem>>, vector<1x32xf32>
    tpu.vector_store %arg9[%c4_23, %c0_24], %19 {strides = array<i32>} : memref<5x32xf32, #tpu.memory_space<vmem>>, vector<1x32xf32>,
    %c0_25 = arith.constant 0 : index
    %c0_26 = arith.constant 0 : index
    %c0_27 = arith.constant 0 : index
    %21 = vector.load %arg1[%c0_25, %c0_26, %c0_27] : memref<10x32x36xf32, #tpu.memory_space<vmem>>, vector<1x32x36xf32>
    %22 = vector.shape_cast %21 : vector<1x32x36xf32> to vector<32x36xf32>
    %cst_28 = arith.constant dense<0.000000e+00> : vector<1x32xf32>
    %23 = tpu.matmul %0, %22, %cst_28 {dimension_numbers = #tpu.dot_dimension_numbers<[1], [1], [0], [0], [0, 0, 1, 0], [], []>} : vector<1x36xf32>, vector<32x36xf32>, vector<1x32xf32> -> vector<1x32xf32>
    %c0_29 = arith.constant 0 : index
    %c0_30 = arith.constant 0 : index
    %24 = vector.load %arg10[%c0_29, %c0_30] : memref<10x32xf32, #tpu.memory_space<vmem>>, vector<1x32xf32>
    tpu.vector_store %arg10[%c0_29, %c0_30], %23 {strides = array<i32>} : memref<10x32xf32, #tpu.memory_space<vmem>>, vector<1x32xf32>,
    %c1_31 = arith.constant 1 : index
    %c0_32 = arith.constant 0 : index
    %c0_33 = arith.constant 0 : index
    %25 = vector.load %arg1[%c1_31, %c0_32, %c0_33] : memref<10x32x36xf32, #tpu.memory_space<vmem>>, vector<1x32x36xf32>
    %26 = vector.shape_cast %25 : vector<1x32x36xf32> to vector<32x36xf32>
    %cst_34 = arith.constant dense<0.000000e+00> : vector<1x32xf32>
    %27 = tpu.matmul %0, %26, %cst_34 {dimension_numbers = #tpu.dot_dimension_numbers<[1], [1], [0], [0], [0, 0, 1, 0], [], []>} : vector<1x36xf32>, vector<32x36xf32>, vector<1x32xf32> -> vector<1x32xf32>
    %c1_35 = arith.constant 1 : index
    %c0_36 = arith.constant 0 : index
    %28 = vector.load %arg10[%c1_35, %c0_36] : memref<10x32xf32, #tpu.memory_space<vmem>>, vector<1x32xf32>
    tpu.vector_store %arg10[%c1_35, %c0_36], %27 {strides = array<i32>} : memref<10x32xf32, #tpu.memory_space<vmem>>, vector<1x32xf32>,
    %c2_37 = arith.constant 2 : index
    %c0_38 = arith.constant 0 : index
    %c0_39 = arith.constant 0 : index
    %29 = vector.load %arg1[%c2_37, %c0_38, %c0_39] : memref<10x32x36xf32, #tpu.memory_space<vmem>>, vector<1x32x36xf32>
    %30 = vector.shape_cast %29 : vector<1x32x36xf32> to vector<32x36xf32>
    %cst_40 = arith.constant dense<0.000000e+00> : vector<1x32xf32>
    %31 = tpu.matmul %0, %30, %cst_40 {dimension_numbers = #tpu.dot_dimension_numbers<[1], [1], [0], [0], [0, 0, 1, 0], [], []>} : vector<1x36xf32>, vector<32x36xf32>, vector<1x32xf32> -> vector<1x32xf32>
    %c2_41 = arith.constant 2 : index
    %c0_42 = arith.constant 0 : index
    %32 = vector.load %arg10[%c2_41, %c0_42] : memref<10x32xf32, #tpu.memory_space<vmem>>, vector<1x32xf32>
    tpu.vector_store %arg10[%c2_41, %c0_42], %31 {strides = array<i32>} : memref<10x32xf32, #tpu.memory_space<vmem>>, vector<1x32xf32>,
    %c3_43 = arith.constant 3 : index
    %c0_44 = arith.constant 0 : index
    %c0_45 = arith.constant 0 : index
    %33 = vector.load %arg1[%c3_43, %c0_44, %c0_45] : memref<10x32x36xf32, #tpu.memory_space<vmem>>, vector<1x32x36xf32>
    %34 = vector.shape_cast %33 : vector<1x32x36xf32> to vector<32x36xf32>
    %cst_46 = arith.constant dense<0.000000e+00> : vector<1x32xf32>
    %35 = tpu.matmul %0, %34, %cst_46 {dimension_numbers = #tpu.dot_dimension_numbers<[1], [1], [0], [0], [0, 0, 1, 0], [], []>} : vector<1x36xf32>, vector<32x36xf32>, vector<1x32xf32> -> vector<1x32xf32>
    %c3_47 = arith.constant 3 : index
    %c0_48 = arith.constant 0 : index
    %36 = vector.load %arg10[%c3_47, %c0_48] : memref<10x32xf32, #tpu.memory_space<vmem>>, vector<1x32xf32>
    tpu.vector_store %arg10[%c3_47, %c0_48], %35 {strides = array<i32>} : memref<10x32xf32, #tpu.memory_space<vmem>>, vector<1x32xf32>,
    %c4_49 = arith.constant 4 : index
    %c0_50 = arith.constant 0 : index
    %c0_51 = arith.constant 0 : index
    %37 = vector.load %arg1[%c4_49, %c0_50, %c0_51] : memref<10x32x36xf32, #tpu.memory_space<vmem>>, vector<1x32x36xf32>
    %38 = vector.shape_cast %37 : vector<1x32x36xf32> to vector<32x36xf32>
    %cst_52 = arith.constant dense<0.000000e+00> : vector<1x32xf32>
    %39 = tpu.matmul %0, %38, %cst_52 {dimension_numbers = #tpu.dot_dimension_numbers<[1], [1], [0], [0], [0, 0, 1, 0], [], []>} : vector<1x36xf32>, vector<32x36xf32>, vector<1x32xf32> -> vector<1x32xf32>
    %c4_53 = arith.constant 4 : index
    %c0_54 = arith.constant 0 : index
    %40 = vector.load %arg10[%c4_53, %c0_54] : memref<10x32xf32, #tpu.memory_space<vmem>>, vector<1x32xf32>
    tpu.vector_store %arg10[%c4_53, %c0_54], %39 {strides = array<i32>} : memref<10x32xf32, #tpu.memory_space<vmem>>, vector<1x32xf32>,
    %c5 = arith.constant 5 : index
    %c0_55 = arith.constant 0 : index
    %c0_56 = arith.constant 0 : index
    %41 = vector.load %arg1[%c5, %c0_55, %c0_56] : memref<10x32x36xf32, #tpu.memory_space<vmem>>, vector<1x32x36xf32>
    %42 = vector.shape_cast %41 : vector<1x32x36xf32> to vector<32x36xf32>
    %cst_57 = arith.constant dense<0.000000e+00> : vector<1x32xf32>
    %43 = tpu.matmul %0, %42, %cst_57 {dimension_numbers = #tpu.dot_dimension_numbers<[1], [1], [0], [0], [0, 0, 1, 0], [], []>} : vector<1x36xf32>, vector<32x36xf32>, vector<1x32xf32> -> vector<1x32xf32>
    %c5_58 = arith.constant 5 : index
    %c0_59 = arith.constant 0 : index
    %44 = vector.load %arg10[%c5_58, %c0_59] : memref<10x32xf32, #tpu.memory_space<vmem>>, vector<1x32xf32>
    tpu.vector_store %arg10[%c5_58, %c0_59], %43 {strides = array<i32>} : memref<10x32xf32, #tpu.memory_space<vmem>>, vector<1x32xf32>,
    %c6 = arith.constant 6 : index
    %c0_60 = arith.constant 0 : index
    %c0_61 = arith.constant 0 : index
    %45 = vector.load %arg1[%c6, %c0_60, %c0_61] : memref<10x32x36xf32, #tpu.memory_space<vmem>>, vector<1x32x36xf32>
    %46 = vector.shape_cast %45 : vector<1x32x36xf32> to vector<32x36xf32>
    %cst_62 = arith.constant dense<0.000000e+00> : vector<1x32xf32>
    %47 = tpu.matmul %0, %46, %cst_62 {dimension_numbers = #tpu.dot_dimension_numbers<[1], [1], [0], [0], [0, 0, 1, 0], [], []>} : vector<1x36xf32>, vector<32x36xf32>, vector<1x32xf32> -> vector<1x32xf32>
    %c6_63 = arith.constant 6 : index
    %c0_64 = arith.constant 0 : index
    %48 = vector.load %arg10[%c6_63, %c0_64] : memref<10x32xf32, #tpu.memory_space<vmem>>, vector<1x32xf32>
    tpu.vector_store %arg10[%c6_63, %c0_64], %47 {strides = array<i32>} : memref<10x32xf32, #tpu.memory_space<vmem>>, vector<1x32xf32>,
    %c7 = arith.constant 7 : index
    %c0_65 = arith.constant 0 : index
    %c0_66 = arith.constant 0 : index
    %49 = vector.load %arg1[%c7, %c0_65, %c0_66] : memref<10x32x36xf32, #tpu.memory_space<vmem>>, vector<1x32x36xf32>
    %50 = vector.shape_cast %49 : vector<1x32x36xf32> to vector<32x36xf32>
    %cst_67 = arith.constant dense<0.000000e+00> : vector<1x32xf32>
    %51 = tpu.matmul %0, %50, %cst_67 {dimension_numbers = #tpu.dot_dimension_numbers<[1], [1], [0], [0], [0, 0, 1, 0], [], []>} : vector<1x36xf32>, vector<32x36xf32>, vector<1x32xf32> -> vector<1x32xf32>
    %c7_68 = arith.constant 7 : index
    %c0_69 = arith.constant 0 : index
    %52 = vector.load %arg10[%c7_68, %c0_69] : memref<10x32xf32, #tpu.memory_space<vmem>>, vector<1x32xf32>
    tpu.vector_store %arg10[%c7_68, %c0_69], %51 {strides = array<i32>} : memref<10x32xf32, #tpu.memory_space<vmem>>, vector<1x32xf32>,
    %c8 = arith.constant 8 : index
    %c0_70 = arith.constant 0 : index
    %c0_71 = arith.constant 0 : index
    %53 = vector.load %arg1[%c8, %c0_70, %c0_71] : memref<10x32x36xf32, #tpu.memory_space<vmem>>, vector<1x32x36xf32>
    %54 = vector.shape_cast %53 : vector<1x32x36xf32> to vector<32x36xf32>
    %cst_72 = arith.constant dense<0.000000e+00> : vector<1x32xf32>
    %55 = tpu.matmul %0, %54, %cst_72 {dimension_numbers = #tpu.dot_dimension_numbers<[1], [1], [0], [0], [0, 0, 1, 0], [], []>} : vector<1x36xf32>, vector<32x36xf32>, vector<1x32xf32> -> vector<1x32xf32>
    %c8_73 = arith.constant 8 : index
    %c0_74 = arith.constant 0 : index
    %56 = vector.load %arg10[%c8_73, %c0_74] : memref<10x32xf32, #tpu.memory_space<vmem>>, vector<1x32xf32>
    tpu.vector_store %arg10[%c8_73, %c0_74], %55 {strides = array<i32>} : memref<10x32xf32, #tpu.memory_space<vmem>>, vector<1x32xf32>,
    %c9 = arith.constant 9 : index
    %c0_75 = arith.constant 0 : index
    %c0_76 = arith.constant 0 : index
    %57 = vector.load %arg1[%c9, %c0_75, %c0_76] : memref<10x32x36xf32, #tpu.memory_space<vmem>>, vector<1x32x36xf32>
    %58 = vector.shape_cast %57 : vector<1x32x36xf32> to vector<32x36xf32>
    %cst_77 = arith.constant dense<0.000000e+00> : vector<1x32xf32>
    %59 = tpu.matmul %0, %58, %cst_77 {dimension_numbers = #tpu.dot_dimension_numbers<[1], [1], [0], [0], [0, 0, 1, 0], [], []>} : vector<1x36xf32>, vector<32x36xf32>, vector<1x32xf32> -> vector<1x32xf32>
    %c9_78 = arith.constant 9 : index
    %c0_79 = arith.constant 0 : index
    %60 = vector.load %arg10[%c9_78, %c0_79] : memref<10x32xf32, #tpu.memory_space<vmem>>, vector<1x32xf32>
    tpu.vector_store %arg10[%c9_78, %c0_79], %59 {strides = array<i32>} : memref<10x32xf32, #tpu.memory_space<vmem>>, vector<1x32xf32>,
    %c0_80 = arith.constant 0 : index
    %c0_81 = arith.constant 0 : index
    %61 = vector.load %arg9[%c0_80, %c0_81] : memref<5x32xf32, #tpu.memory_space<vmem>>, vector<5x32xf32>
    %c0_82 = arith.constant 0 : index
    %c0_83 = arith.constant 0 : index
    %62 = vector.load %arg2[%c0_82, %c0_83] : memref<5x5xf32, #tpu.memory_space<vmem>>, vector<5x5xf32>
    %63 = tpu.iota {dimensions = array<i32: 0>} : vector<4x5xi32>
    %64 = tpu.iota {dimensions = array<i32: 1>} : vector<4x5xi32>
    %65 = tpu.iota {dimensions = array<i32: 0>} : vector<4x5xi32>
    %c0_84 = arith.constant 0 : index
    %c0_85 = arith.constant 0 : index
    %66 = vector.load %arg3[%c0_84, %c0_85] : memref<5x32xf32, #tpu.memory_space<vmem>>, vector<5x32xf32>
    %cst_86 = arith.constant 0.000000e+00 : f32
    %67 = vector.broadcast %cst_86 : f32 to vector<5x32xf32>
    %c0_i32 = arith.constant 0 : i32
    %c200_i32 = arith.constant 200 : i32
    %68 = arith.addi %c0_i32, %c200_i32 : i32
    %c1_i32 = arith.constant 1 : i32
    %69:2 = scf.for %arg11 = %c0_i32 to %68 step %c1_i32 iter_args(%arg12 = %66, %arg13 = %67) -> (vector<5x32xf32>, vector<5x32xf32>)  : i32 {
      %c0_i32_103 = arith.constant 0 : i32
      %105 = vector.broadcast %c0_i32_103 : i32 to vector<4x5xi32>
      %c0_i32_104 = arith.constant 0 : i32
      %106 = vector.broadcast %c0_i32_104 : i32 to vector<4x5xi32>
      %107 = arith.cmpi eq, %63, %106 : vector<4x5xi32>
      %c4_i32 = arith.constant 4 : i32
      %108 = arith.muli %arg11, %c4_i32 : i32
      %c0_i32_105 = arith.constant 0 : i32
      %109 = arith.addi %108, %c0_i32_105 : i32
      %110 = arith.index_cast %109 : i32 to index
      %111 = memref.load %arg5[%110] : memref<800xi32, #tpu.memory_space<smem>>
      %112 = vector.broadcast %111 : i32 to vector<4x5xi32>
      %113 = arith.select %107, %112, %105 : vector<4x5xi1>, vector<4x5xi32>
      %c1_i32_106 = arith.constant 1 : i32
      %114 = vector.broadcast %c1_i32_106 : i32 to vector<4x5xi32>
      %115 = arith.cmpi eq, %63, %114 : vector<4x5xi32>
      %c4_i32_107 = arith.constant 4 : i32
      %116 = arith.muli %arg11, %c4_i32_107 : i32
      %c1_i32_108 = arith.constant 1 : i32
      %117 = arith.addi %116, %c1_i32_108 : i32
      %118 = arith.index_cast %117 : i32 to index
      %119 = memref.load %arg5[%118] : memref<800xi32, #tpu.memory_space<smem>>
      %120 = vector.broadcast %119 : i32 to vector<4x5xi32>
      %121 = arith.select %115, %120, %113 : vector<4x5xi1>, vector<4x5xi32>
      %c2_i32 = arith.constant 2 : i32
      %122 = vector.broadcast %c2_i32 : i32 to vector<4x5xi32>
      %123 = arith.cmpi eq, %63, %122 : vector<4x5xi32>
      %c4_i32_109 = arith.constant 4 : i32
      %124 = arith.muli %arg11, %c4_i32_109 : i32
      %c2_i32_110 = arith.constant 2 : i32
      %125 = arith.addi %124, %c2_i32_110 : i32
      %126 = arith.index_cast %125 : i32 to index
      %127 = memref.load %arg5[%126] : memref<800xi32, #tpu.memory_space<smem>>
      %128 = vector.broadcast %127 : i32 to vector<4x5xi32>
      %129 = arith.select %123, %128, %121 : vector<4x5xi1>, vector<4x5xi32>
      %c3_i32 = arith.constant 3 : i32
      %130 = vector.broadcast %c3_i32 : i32 to vector<4x5xi32>
      %131 = arith.cmpi eq, %63, %130 : vector<4x5xi32>
      %c4_i32_111 = arith.constant 4 : i32
      %132 = arith.muli %arg11, %c4_i32_111 : i32
      %c3_i32_112 = arith.constant 3 : i32
      %133 = arith.addi %132, %c3_i32_112 : i32
      %134 = arith.index_cast %133 : i32 to index
      %135 = memref.load %arg5[%134] : memref<800xi32, #tpu.memory_space<smem>>
      %136 = vector.broadcast %135 : i32 to vector<4x5xi32>
      %137 = arith.select %131, %136, %129 : vector<4x5xi1>, vector<4x5xi32>
      %138 = arith.cmpi eq, %64, %137 : vector<4x5xi32>
      %139 = arith.extui %138 : vector<4x5xi1> to vector<4x5xi32>
      %140 = arith.sitofp %139 : vector<4x5xi32> to vector<4x5xf32>
      %cst_113 = arith.constant dense<0.000000e+00> : vector<4x32xf32>
      %141 = tpu.matmul %140, %61, %cst_113 {dimension_numbers = #tpu.dot_dimension_numbers<[1], [0], [0], [1], [0, 0, 1, 1], [], []>} : vector<4x5xf32>, vector<5x32xf32>, vector<4x32xf32> -> vector<4x32xf32>
      %cst_114 = arith.constant dense<0.000000e+00> : vector<4x5xf32>
      %142 = tpu.matmul %140, %62, %cst_114 {dimension_numbers = #tpu.dot_dimension_numbers<[1], [0], [0], [1], [0, 0, 1, 1], [], []>} : vector<4x5xf32>, vector<5x5xf32>, vector<4x5xf32> -> vector<4x5xf32>
      %143 = arith.index_cast %arg11 : i32 to index
      %144 = memref.load %arg6[%143] : memref<200xi32, #tpu.memory_space<smem>>
      %145 = vector.broadcast %144 : i32 to vector<4x5xi32>
      %146 = arith.cmpi slt, %65, %145 : vector<4x5xi32>
      %147 = arith.index_cast %arg11 : i32 to index
      %148 = memref.load %arg7[%147] : memref<200xf32, #tpu.memory_space<smem>>
      %cst_115 = arith.constant 0.000000e+00 : f32
      %149 = vector.broadcast %148 : f32 to vector<4x5xf32>
      %150 = vector.broadcast %cst_115 : f32 to vector<4x5xf32>
      %151 = arith.select %146, %149, %150 : vector<4x5xi1>, vector<4x5xf32>
      %152 = arith.mulf %141, %141 : vector<4x32xf32>
      %cst_116 = arith.constant dense<0.000000e+00> : vector<4xf32>
      %153 = vector.multi_reduction <add>, %152, %cst_116 [1] : vector<4x32xf32> to vector<4xf32>
      %154 = vector.shape_cast %153 : vector<4xf32> to vector<4x1xf32>
      %cst_117 = arith.constant 1.000000e-24 : f32
      %155 = vector.broadcast %cst_117 : f32 to vector<4x1xf32>
      %156 = arith.maximumf %154, %155 : vector<4x1xf32>
      %157 = math.rsqrt %156 : vector<4x1xf32>
      %158 = vector.broadcast %157 : vector<4x1xf32> to vector<4x32xf32>
      %159 = arith.mulf %141, %158 : vector<4x32xf32>
      %160 = arith.mulf %arg12, %arg12 : vector<5x32xf32>
      %cst_118 = arith.constant dense<0.000000e+00> : vector<5xf32>
      %161 = vector.multi_reduction <add>, %160, %cst_118 [1] : vector<5x32xf32> to vector<5xf32>
      %162 = vector.shape_cast %161 : vector<5xf32> to vector<5x1xf32>
      %cst_119 = arith.constant 1.000000e-24 : f32
      %163 = vector.broadcast %cst_119 : f32 to vector<5x1xf32>
      %164 = arith.maximumf %162, %163 : vector<5x1xf32>
      %165 = math.rsqrt %164 : vector<5x1xf32>
      %166 = vector.broadcast %165 : vector<5x1xf32> to vector<5x32xf32>
      %167 = arith.mulf %arg12, %166 : vector<5x32xf32>
      %cst_120 = arith.constant dense<0.000000e+00> : vector<4x5xf32>
      %168 = tpu.matmul %159, %167, %cst_120 {dimension_numbers = #tpu.dot_dimension_numbers<[1], [1], [0], [0], [0, 0, 1, 0], [], []>} : vector<4x32xf32>, vector<5x32xf32>, vector<4x5xf32> -> vector<4x5xf32>
      %cst_121 = arith.constant 4.000000e-01 : f32
      %169 = vector.broadcast %cst_121 : f32 to vector<4x5xf32>
      %170 = arith.mulf %169, %142 : vector<4x5xf32>
      %171 = arith.subf %168, %170 : vector<4x5xf32>
      %cst_122 = arith.constant 3.000000e+01 : f32
      %172 = vector.broadcast %cst_122 : f32 to vector<4x5xf32>
      %173 = arith.mulf %172, %171 : vector<4x5xf32>
      %cst_123 = arith.constant dense<0xFF800000> : vector<4xf32>
      %174 = vector.multi_reduction <maximumf>, %173, %cst_123 [1] : vector<4x5xf32> to vector<4xf32>
      %175 = vector.shape_cast %174 : vector<4xf32> to vector<4x1xf32>
      %176 = vector.broadcast %175 : vector<4x1xf32> to vector<4x5xf32>
      %177 = arith.subf %173, %176 : vector<4x5xf32>
      %178 = math.exp %177 : vector<4x5xf32>
      %cst_124 = arith.constant dense<0.000000e+00> : vector<4xf32>
      %179 = vector.multi_reduction <add>, %178, %cst_124 [1] : vector<4x5xf32> to vector<4xf32>
      %180 = vector.shape_cast %179 : vector<4xf32> to vector<4x1xf32>
      %181 = vector.broadcast %180 : vector<4x1xf32> to vector<4x5xf32>
      %182 = arith.divf %178, %181 : vector<4x5xf32>
      %183 = arith.subf %182, %142 : vector<4x5xf32>
      %cst_125 = arith.constant 3.000000e+01 : f32
      %184 = vector.broadcast %cst_125 : f32 to vector<4x5xf32>
      %185 = arith.mulf %184, %183 : vector<4x5xf32>
      %186 = arith.mulf %185, %151 : vector<4x5xf32>
      %cst_126 = arith.constant dense<0.000000e+00> : vector<5x32xf32>
      %187 = tpu.matmul %186, %159, %cst_126 {dimension_numbers = #tpu.dot_dimension_numbers<[0], [0], [1], [1], [0, 1, 1, 1], [], []>} : vector<4x5xf32>, vector<4x32xf32>, vector<5x32xf32> -> vector<5x32xf32>
      %188 = arith.mulf %187, %167 : vector<5x32xf32>
      %cst_127 = arith.constant dense<0.000000e+00> : vector<5xf32>
      %189 = vector.multi_reduction <add>, %188, %cst_127 [1] : vector<5x32xf32> to vector<5xf32>
      %190 = vector.shape_cast %189 : vector<5xf32> to vector<5x1xf32>
      %191 = vector.broadcast %190 : vector<5x1xf32> to vector<5x32xf32>
      %192 = arith.mulf %167, %191 : vector<5x32xf32>
      %193 = arith.subf %187, %192 : vector<5x32xf32>
      %194 = vector.broadcast %165 : vector<5x1xf32> to vector<5x32xf32>
      %195 = arith.mulf %193, %194 : vector<5x32xf32>
      %cst_128 = arith.constant 1.000000e-03 : f32
      %196 = vector.broadcast %cst_128 : f32 to vector<5x32xf32>
      %197 = arith.mulf %196, %arg12 : vector<5x32xf32>
      %198 = arith.addf %195, %197 : vector<5x32xf32>
      %c0_i32_129 = arith.constant 0 : i32
      %199 = arith.cmpi eq, %arg11, %c0_i32_129 : i32
      %cst_130 = arith.constant 0.899999976 : f32
      %200 = vector.broadcast %cst_130 : f32 to vector<5x32xf32>
      %201 = arith.mulf %200, %arg13 : vector<5x32xf32>
      %cst_131 = arith.constant 1.000000e-01 : f32
      %202 = vector.broadcast %cst_131 : f32 to vector<5x32xf32>
      %203 = arith.mulf %202, %198 : vector<5x32xf32>
      %204 = arith.addf %201, %203 : vector<5x32xf32>
      %205 = arith.select %199, %198, %204 : vector<5x32xf32>
      %cst_132 = arith.constant 0.00999999977 : f32
      %206 = vector.broadcast %cst_132 : f32 to vector<5x32xf32>
      %207 = arith.mulf %206, %205 : vector<5x32xf32>
      %208 = arith.subf %arg12, %207 : vector<5x32xf32>
      scf.yield %208, %205 : vector<5x32xf32>, vector<5x32xf32>
    }
    %c200_i32_87 = arith.constant 200 : i32
    %c0_88 = arith.constant 0 : index
    %c0_89 = arith.constant 0 : index
    %70 = vector.load %arg10[%c0_88, %c0_89] : memref<10x32xf32, #tpu.memory_space<vmem>>, vector<10x32xf32>
    %71 = arith.mulf %70, %70 : vector<10x32xf32>
    %cst_90 = arith.constant dense<0.000000e+00> : vector<10xf32>
    %72 = vector.multi_reduction <add>, %71, %cst_90 [1] : vector<10x32xf32> to vector<10xf32>
    %73 = vector.shape_cast %72 : vector<10xf32> to vector<10x1xf32>
    %cst_91 = arith.constant 1.000000e-24 : f32
    %74 = vector.broadcast %cst_91 : f32 to vector<10x1xf32>
    %75 = arith.maximumf %73, %74 : vector<10x1xf32>
    %76 = math.rsqrt %75 : vector<10x1xf32>
    %77 = vector.broadcast %76 : vector<10x1xf32> to vector<10x32xf32>
    %78 = arith.mulf %70, %77 : vector<10x32xf32>
    %79 = arith.mulf %69#0, %69#0 : vector<5x32xf32>
    %cst_92 = arith.constant dense<0.000000e+00> : vector<5xf32>
    %80 = vector.multi_reduction <add>, %79, %cst_92 [1] : vector<5x32xf32> to vector<5xf32>
    %81 = vector.shape_cast %80 : vector<5xf32> to vector<5x1xf32>
    %cst_93 = arith.constant 1.000000e-24 : f32
    %82 = vector.broadcast %cst_93 : f32 to vector<5x1xf32>
    %83 = arith.maximumf %81, %82 : vector<5x1xf32>
    %84 = math.rsqrt %83 : vector<5x1xf32>
    %85 = vector.broadcast %84 : vector<5x1xf32> to vector<5x32xf32>
    %86 = arith.mulf %69#0, %85 : vector<5x32xf32>
    %cst_94 = arith.constant dense<0.000000e+00> : vector<10x5xf32>
    %87 = tpu.matmul %78, %86, %cst_94 {dimension_numbers = #tpu.dot_dimension_numbers<[1], [1], [0], [0], [0, 0, 1, 0], [], []>} : vector<10x32xf32>, vector<5x32xf32>, vector<10x5xf32> -> vector<10x5xf32>
    %cst_95 = arith.constant 3.000000e+01 : f32
    %88 = vector.broadcast %cst_95 : f32 to vector<10x5xf32>
    %89 = arith.mulf %88, %87 : vector<10x5xf32>
    %cst_96 = arith.constant dense<0xFF800000> : vector<10xf32>
    %90 = vector.multi_reduction <maximumf>, %89, %cst_96 [1] : vector<10x5xf32> to vector<10xf32>
    %91 = vector.shape_cast %90 : vector<10xf32> to vector<10x1xf32>
    %92 = tpu.iota {dimensions = array<i32: 1>} : vector<10x5xi32>
    %93 = arith.sitofp %92 : vector<10x5xi32> to vector<10x5xf32>
    %94 = vector.broadcast %91 : vector<10x1xf32> to vector<10x5xf32>
    %95 = arith.cmpf oeq, %89, %94 : vector<10x5xf32>
    %cst_97 = arith.constant 5.000000e+00 : f32
    %96 = vector.broadcast %cst_97 : f32 to vector<10x5xf32>
    %97 = arith.select %95, %93, %96 : vector<10x5xi1>, vector<10x5xf32>
    %cst_98 = arith.constant dense<0x7F800000> : vector<10xf32>
    %98 = vector.multi_reduction <minimumf>, %97, %cst_98 [1] : vector<10x5xf32> to vector<10xf32>
    %99 = vector.shape_cast %98 : vector<10xf32> to vector<10x1xf32>
    %100 = arith.fptosi %99 : vector<10x1xf32> to vector<10x1xi32>
    %c0_99 = arith.constant 0 : index
    %c0_100 = arith.constant 0 : index
    %101 = vector.load %arg4[%c0_99, %c0_100] : memref<10x1xi32, #tpu.memory_space<vmem>>, vector<10x1xi32>
    %102 = arith.cmpi eq, %100, %101 : vector<10x1xi32>
    %103 = arith.extui %102 : vector<10x1xi1> to vector<10x1xi32>
    %c0_101 = arith.constant 0 : index
    %c0_102 = arith.constant 0 : index
    %104 = vector.load %arg8[%c0_101, %c0_102] : memref<10x1xi32, #tpu.memory_space<vmem>>, vector<10x1xi32>
    tpu.vector_store %arg8[%c0_101, %c0_102], %103 {strides = array<i32>} : memref<10x1xi32, #tpu.memory_space<vmem>>, vector<10x1xi32>,
    return
  }
}

</mosaic_0001>

<bundles_post_ra>
// kernel: _device_forward.1
= control target key start
LH: loop header
LB: loop body
LE: loop exit
PB: predicated region body
PF: predicated region fallthrough
CT: control target
= control target key end

     0   :  { %13 = vsyncpa [#allocation5], 0  ;;  %s3036_s0 = inlined_call_operand.vmem [shape: f32[5,32,36], index: 0, kind: input, shape index: {}]   ;;  %s3037_s1 = inlined_call_operand.vmem [shape: f32[10,32,36], index: 1, kind: input, shape index: {}]   ;;  %s3038_s2 = inlined_call_operand.vmem [shape: f32[5,5], index: 2, kind: input, shape index: {}]   ;;  %s3039_s3 = inlined_call_operand.vmem [shape: f32[5,32], index: 3, kind: input, shape index: {}]   ;;  %s3040_s4 = inlined_call_operand.vmem [shape: s32[10,1], index: 4, kind: input, shape index: {}]   ;;  %s3041_s5 = inlined_call_operand.vmem [shape: s32[800], index: 5, kind: input, shape index: {}]   ;;  %s3042_s6 = inlined_call_operand.vmem [shape: s32[200], index: 6, kind: input, shape index: {}]   ;;  %s3043_s7 = inlined_call_operand.vmem [shape: f32[200], index: 7, kind: input, shape index: {}]   ;;  %s3044_s8 = inlined_call_operand.vmem [shape: s32[10,1], index: 8, kind: output, shape index: {}]  }
   0x1   :  { %14 = vsyncpa [#allocation7], 0  ;;  %s41_s29 = sshll.u32 %s3042_s6, 4  ;;  %s31_s10 = sshll.u32 %s3041_s5, 4  ;;  %s42_s29 = int_to_ptr.vmem [resolvable:$true] %s41_s29  ;;  %s32_s10 = int_to_ptr.vmem [resolvable:$true] %s31_s10 }
   0x2   :  { %s2449_s11 = scalar_lea.vmem %s42_s29, 32  ;;  %p2454_p1 = scmp.lt.s32.totalorder %s42_s29, %s42_s29 }
   0x3   :  { %p2450_p0 = scmp.ne.s32.totalorder %s42_s29, %s2449_s11  ;;  %p2455_p2 = scmp.lt.s32.totalorder %s2449_s11, %s2449_s11 }
   0x5   :  { %p2456_p3 = por %p2455_p2, %p2454_p1 }
   0x7   :  { %p2457_p4 = pnand %p2456_p3, %p2450_p0 }
   0x9   :  { %2460 = shalt.err (!%p2457_p4)
}
   0xa   :  { %s2513_s12 = smov [#allocation6]   ;;  %s2461_s13 = scalar_lea.vmem %s32_s10, 112 }
   0xb   :  { %44 = dma.vmem_to_smem %s42_s29, 32, %s2513_s12, [#allocation7]  }
   0xc   :  { %p2462_p5 = scmp.ne.s32.totalorder %s32_s10, %s2461_s13  ;;  %s2465_s14 = scalar_lea.vmem %s32_s10, 128 }
   0xd   :  { %p2466_p6 = scmp.lt.s32.totalorder %s32_s10, %s32_s10  ;;  %p2467_p7 = scmp.lt.s32.totalorder %s2465_s14, %s2461_s13 }
   0xf   :  { %p2468_p8 = por %p2467_p7, %p2466_p6 }
  0x11   :  { %p2469_p9 = pnand %p2468_p8, %p2462_p5 }
  0x13   :  { %2472 = shalt.err (!%p2469_p9)
}
  0x14   :  { %s2514_s6 = smov [#allocation4]   ;;  %s51_s16 = sshll.u32 %s3043_s7, 4  ;;  %s52_s16 = int_to_ptr.vmem [resolvable:$true] %s51_s16 }
  0x15   :  { %34 = dma.vmem_to_smem %s32_s10, 112, %s2514_s6, [#allocation5]  }
  0x16   :  { %s2473_s17 = scalar_lea.vmem %s52_s16, 32  ;;  %p2478_p11 = scmp.lt.s32.totalorder %s52_s16, %s52_s16 }
  0x17   :  { %p2474_p10 = scmp.ne.s32.totalorder %s52_s16, %s2473_s17  ;;  %p2479_p12 = scmp.lt.s32.totalorder %s2473_s17, %s2473_s17 }
  0x19   :  { %p2480_p13 = por %p2479_p12, %p2478_p11 }
  0x1b   :  { %p2481_p0 = pnand %p2480_p13, %p2474_p10 }
  0x1d   :  { %2484 = shalt.err (!%p2481_p0)
}
  0x1e   :  { %s2515_s18 = smov [#allocation8]  }
  0x1f   :  { %54 = dma.vmem_to_smem %s52_s16, 32, %s2515_s18, [#allocation7]  }
  0x20   :  { %2497 = dma.done.wait [#allocation5], 112  }
  0x21   :  { %2498 = vsyncadd [#allocation5], 4294967184 }
  0x22   :  { %2499 = dma.done.wait [#allocation7], 64  }
  0x23   :  { %2500 = vsyncadd [#allocation7], 4294967232 }
  0x24   :  { %64 = sfence }
  0x25   :  { %v68_v0 = vld [vmem:[%s3036_s0 + $0x18] sm:$0xff]  ;;  %vm69_vm0 = vcmask 293888   ;;  %v2516_v1 = vmov 0.0   ;;  %vm2517_vm1 = vmmov 0   ;;  %v67_v3 = vld [vmem:[%s3036_s0 + $0x10] sm:$0xff]  ;;  %v66_v5 = vld [vmem:[%s3036_s0 + $0x8] sm:$0xff]  ;;  %v1390_v62 = vlaneseq }
  0x26   :  { %2208 = vmatprep.subr.mxu0 %v2516_v1  ;;  %2219 = vmatprep.subr.mxu1 %v2516_v1  ;;  %v1990_v2 = vld [vmem:[%s3036_s0 + $0x38] sm:$0xff]  ;;  %v1989_v4 = vld [vmem:[%s3036_s0 + $0x30] sm:$0xff]  ;;  %v1988_v6 = vld [vmem:[%s3036_s0 + $0x28] sm:$0xff]  ;;  %v2518_v10 = vmov 0.027777778   ;;  %vm155_vm2 = vcmask 253952  }
  0x27   :  { %2209 = vmatpush3.xpose.msk.msra.mxu0 %vm69_vm0, %v68_v0  ;;  %2216 = vmatprep.mubr.msk.f32.mxu0 %vm2517_vm1, %v2516_v1  ;;  %v65_v7 = vld [vmem:[%s3036_s0] sm:$0xff]  ;;  %v1999_v9 = vld [vmem:[%s3036_s0 + $0x58] sm:$0xff]  ;;  %v1998_v12 = vld [vmem:[%s3036_s0 + $0x50] sm:$0xff]  ;;  %v2941_v0 = vshrl.u32 %v1390_v62, 7 }
  0x28   :  { %2210 = vmatprep.subr.mxu0 %v2516_v1  ;;  %2220 = vmatpush3.xpose.msk.msra.mxu1 %vm69_vm0, %v1990_v2  ;;  %v1987_v8 = vld [vmem:[%s3036_s0 + $0x20] sm:$0xff]  ;;  %v2008_v11 = vld [vmem:[%s3036_s0 + $0x78] sm:$0xff]  ;;  %v2007_v13 = vld [vmem:[%s3036_s0 + $0x70] sm:$0xff]  ;;  %v2943_v2 = vand.u32 127, %v1390_v62 }
  0x29   :  { %2221 = vmatprep.subr.mxu1 %v2516_v1  ;;  %2227 = vmatprep.mubr.msk.f32.mxu1 %vm2517_vm1, %v2516_v1  ;;  %v1997_v14 = vld [vmem:[%s3036_s0 + $0x48] sm:$0xff]  ;;  %v1996_v16 = vld [vmem:[%s3036_s0 + $0x40] sm:$0xff]  ;;  %v2017_v18 = vld [vmem:[%s3036_s0 + $0x98] sm:$0xff] }
  0x2a   :  { %v2006_v15 = vld [vmem:[%s3036_s0 + $0x68] sm:$0xff]  ;;  %v2005_v17 = vld [vmem:[%s3036_s0 + $0x60] sm:$0xff]  ;;  %v512_v19 = vld [vmem:[%s3037_s1 + $0x18] sm:$0xff] }
  0x2b   :  { %2211 = vmatpush3.xpose.msk.msra.mxu0 %vm69_vm0, %v67_v3  ;;  %v2016_v20 = vld [vmem:[%s3036_s0 + $0x90] sm:$0xff]  ;;  %v2015_v22 = vld [vmem:[%s3036_s0 + $0x88] sm:$0xff]  ;;  %v2014_v24 = vld [vmem:[%s3036_s0 + $0x80] sm:$0xff] }
  0x2c   :  { %2212 = vmatprep.subr.mxu0 %v2516_v1  ;;  %2222 = vmatpush3.xpose.msk.msra.mxu1 %vm69_vm0, %v1989_v4  ;;  %v511_v21 = vld [vmem:[%s3037_s1 + $0x10] sm:$0xff]  ;;  %v510_v23 = vld [vmem:[%s3037_s1 + $0x8] sm:$0xff]  ;;  %v509_v25 = vld [vmem:[%s3037_s1] sm:$0xff] }
  0x2d   :  { %2223 = vmatprep.subr.mxu1 %v2516_v1  ;;  %v2031_v26 = vld [vmem:[%s3037_s1 + $0x38] sm:$0xff]  ;;  %v2030_v28 = vld [vmem:[%s3037_s1 + $0x30] sm:$0xff]  ;;  %v2029_v30 = vld [vmem:[%s3037_s1 + $0x28] sm:$0xff] }
  0x2e   :  { %v2040_v27 = vld [vmem:[%s3037_s1 + $0x58] sm:$0xff]  ;;  %v2039_v29 = vld [vmem:[%s3037_s1 + $0x50] sm:$0xff]  ;;  %v2038_v31 = vld [vmem:[%s3037_s1 + $0x48] sm:$0xff] }
  0x2f   :  { %2213 = vmatpush3.xpose.msk.msra.mxu0 %vm69_vm0, %v66_v5  ;;  %v2028_v32 = vld [vmem:[%s3037_s1 + $0x20] sm:$0xff]  ;;  %v2049_v34 = vld [vmem:[%s3037_s1 + $0x78] sm:$0xff]  ;;  %v2048_v36 = vld [vmem:[%s3037_s1 + $0x70] sm:$0xff] }
  0x30   :  { %2214 = vmatprep.subr.mxu0 %v2516_v1  ;;  %2224 = vmatpush3.xpose.msk.msra.mxu1 %vm69_vm0, %v1988_v6  ;;  %v2037_v33 = vld [vmem:[%s3037_s1 + $0x40] sm:$0xff]  ;;  %v2058_v35 = vld [vmem:[%s3037_s1 + $0x98] sm:$0xff]  ;;  %v2057_v37 = vld [vmem:[%s3037_s1 + $0x90] sm:$0xff] }
  0x31   :  { %2225 = vmatprep.subr.mxu1 %v2516_v1  ;;  %v2047_v38 = vld [vmem:[%s3037_s1 + $0x68] sm:$0xff]  ;;  %v2046_v40 = vld [vmem:[%s3037_s1 + $0x60] sm:$0xff]  ;;  %v2067_v42 = vld [vmem:[%s3037_s1 + $0xb8] sm:$0xff] }
  0x32   :  { %v2056_v39 = vld [vmem:[%s3037_s1 + $0x88] sm:$0xff]  ;;  %v2055_v41 = vld [vmem:[%s3037_s1 + $0x80] sm:$0xff]  ;;  %v2076_v43 = vld [vmem:[%s3037_s1 + $0xd8] sm:$0xff] }
  0x33   :  { %2215 = vmatpush3.xpose.msk.msra.mxu0 %vm69_vm0, %v65_v7  ;;  %v2066_v44 = vld [vmem:[%s3037_s1 + $0xb0] sm:$0xff]  ;;  %v2065_v46 = vld [vmem:[%s3037_s1 + $0xa8] sm:$0xff]  ;;  %v2064_v48 = vld [vmem:[%s3037_s1 + $0xa0] sm:$0xff] }
  0x34   :  { %2230 = vmatprep.subr.mxu0 %v2516_v1  ;;  %2226 = vmatpush3.xpose.msk.msra.mxu1 %vm69_vm0, %v1987_v8  ;;  %v2075_v45 = vld [vmem:[%s3037_s1 + $0xd0] sm:$0xff]  ;;  %v2074_v47 = vld [vmem:[%s3037_s1 + $0xc8] sm:$0xff]  ;;  %v2073_v49 = vld [vmem:[%s3037_s1 + $0xc0] sm:$0xff] }
  0x35   :  { %2241 = vmatprep.subr.mxu1 %v2516_v1  ;;  %v2085_v50 = vld [vmem:[%s3037_s1 + $0xf8] sm:$0xff]  ;;  %v2084_v52 = vld [vmem:[%s3037_s1 + $0xf0] sm:$0xff]  ;;  %v2083_v54 = vld [vmem:[%s3037_s1 + $0xe8] sm:$0xff] }
  0x36   :  { %2217 = vmatmul.mubr.msk.f32.vlgmr.msra.gmra.mxu0 %vm69_vm0, %v2518_v10  ;;  %v2094_v51 = vld [vmem:[%s3037_s1 + $0x118] sm:$0xff]  ;;  %v2093_v53 = vld [vmem:[%s3037_s1 + $0x110] sm:$0xff]  ;;  %v2092_v55 = vld [vmem:[%s3037_s1 + $0x108] sm:$0xff] }
  0x37   :  { %2231 = vmatpush3.xpose.msk.msra.mxu0 %vm69_vm0, %v1999_v9  ;;  %2228 = vmatmul.mubr.msk.f32.vlgmr.msra.gmra.mxu1 %vm69_vm0, %v2518_v10  ;;  %v2082_v56 = vld [vmem:[%s3037_s1 + $0xe0] sm:$0xff]  ;;  %v2103_v58 = vld [vmem:[%s3037_s1 + $0x138] sm:$0xff]  ;;  %v2102_v59 = vld [vmem:[%s3037_s1 + $0x130] sm:$0xff] }
  0x38   :  { %2232 = vmatprep.subr.mxu0 %v2516_v1  ;;  %2238 = vmatprep.mubr.msk.f32.mxu0 %vm2517_vm1, %v2516_v1  ;;  %v2091_v57 = vld [vmem:[%s3037_s1 + $0x100] sm:$0xff]  ;;  %v2101_v60 = vld [vmem:[%s3037_s1 + $0x128] sm:$0xff] }
  0x39   :  { %2242 = vmatpush3.xpose.msk.msra.mxu1 %vm69_vm0, %v2008_v11  ;;  %2249 = vmatprep.mubr.msk.f32.mxu1 %vm2517_vm1, %v2516_v1  ;;  %v2100_v61 = vld [vmem:[%s3037_s1 + $0x120] sm:$0xff]  ;;  %s2969_s1 = smov 0  }
  0x3a   :  { %2243 = vmatprep.subr.mxu1 %v2516_v1  ;;  %v2939_v63 = vld [vmem:[%s3038_s2] sm:$0x1f] }
  0x3b   :  { %2233 = vmatpush3.xpose.msk.msra.mxu0 %vm69_vm0, %v1998_v12 }
  0x3c   :  { %2234 = vmatprep.subr.mxu0 %v2516_v1 }
  0x3d   :  { %2244 = vmatpush3.xpose.msk.msra.mxu1 %vm69_vm0, %v2007_v13 }
  0x3e   :  { %2245 = vmatprep.subr.mxu1 %v2516_v1 }
  0x3f   :  { %2235 = vmatpush3.xpose.msk.msra.mxu0 %vm69_vm0, %v1997_v14 }
  0x40   :  { %2236 = vmatprep.subr.mxu0 %v2516_v1 }
  0x41   :  { %2246 = vmatpush3.xpose.msk.msra.mxu1 %vm69_vm0, %v2006_v15 }
  0x42   :  { %2247 = vmatprep.subr.mxu1 %v2516_v1 }
  0x43   :  { %2237 = vmatpush3.xpose.msk.msra.mxu0 %vm69_vm0, %v1996_v16 }
  0x44   :  { %2252 = vmatprep.subr.mxu0 %v2516_v1 }
  0x45   :  { %2248 = vmatpush3.xpose.msk.msra.mxu1 %vm69_vm0, %v2005_v17 }
  0x46   :  { %2239 = vmatmul.mubr.msk.f32.vlgmr.msra.gmra.mxu0 %vm69_vm0, %v2518_v10  ;;  %2263 = vmatprep.subr.mxu1 %v2516_v1 }
  0x47   :  { %2253 = vmatpush3.xpose.msk.msra.mxu0 %vm69_vm0, %v2017_v18  ;;  %2260 = vmatprep.mubr.msk.f32.mxu0 %vm2517_vm1, %v2516_v1 }
  0x48   :  { %2254 = vmatprep.subr.mxu0 %v2516_v1  ;;  %2250 = vmatmul.mubr.msk.f32.vlgmr.msra.gmra.mxu1 %vm69_vm0, %v2518_v10 }
  0x49   :  { %2264 = vmatpush3.xpose.msk.msra.mxu1 %vm69_vm0, %v512_v19  ;;  %2271 = vmatprep.mubr.msk.f32.mxu1 %vm2517_vm1, %v2516_v1 }
  0x4a   :  { %2265 = vmatprep.subr.mxu1 %v2516_v1 }
  0x4b   :  { %2255 = vmatpush3.xpose.msk.msra.mxu0 %vm69_vm0, %v2016_v20 }
  0x4c   :  { %2256 = vmatprep.subr.mxu0 %v2516_v1 }
  0x4d   :  { %2266 = vmatpush3.xpose.msk.msra.mxu1 %vm69_vm0, %v511_v21 }
  0x4e   :  { %2267 = vmatprep.subr.mxu1 %v2516_v1 }
  0x4f   :  { %2257 = vmatpush3.xpose.msk.msra.mxu0 %vm69_vm0, %v2015_v22 }
  0x50   :  { %2258 = vmatprep.subr.mxu0 %v2516_v1 }
  0x51   :  { %2268 = vmatpush3.xpose.msk.msra.mxu1 %vm69_vm0, %v510_v23 }
  0x52   :  { %2269 = vmatprep.subr.mxu1 %v2516_v1 }
  0x53   :  { %2259 = vmatpush3.xpose.msk.msra.mxu0 %vm69_vm0, %v2014_v24 }
  0x54   :  { %2274 = vmatprep.subr.mxu0 %v2516_v1 }
  0x55   :  { %2270 = vmatpush3.xpose.msk.msra.mxu1 %vm69_vm0, %v509_v25 }
  0x56   :  { %2261 = vmatmul.mubr.msk.f32.vlgmr.msra.gmra.mxu0 %vm69_vm0, %v2518_v10  ;;  %2285 = vmatprep.subr.mxu1 %v2516_v1 }
  0x57   :  { %2275 = vmatpush3.xpose.msk.msra.mxu0 %vm69_vm0, %v2031_v26  ;;  %2282 = vmatprep.mubr.msk.f32.mxu0 %vm2517_vm1, %v2516_v1 }
  0x58   :  { %2276 = vmatprep.subr.mxu0 %v2516_v1  ;;  %2272 = vmatmul.mubr.msk.f32.vlgmr.msra.gmra.mxu1 %vm69_vm0, %v2518_v10 }
  0x59   :  { %2286 = vmatpush3.xpose.msk.msra.mxu1 %vm69_vm0, %v2040_v27  ;;  %2293 = vmatprep.mubr.msk.f32.mxu1 %vm2517_vm1, %v2516_v1 }
  0x5a   :  { %2287 = vmatprep.subr.mxu1 %v2516_v1 }
  0x5b   :  { %2277 = vmatpush3.xpose.msk.msra.mxu0 %vm69_vm0, %v2030_v28 }
  0x5c   :  { %2278 = vmatprep.subr.mxu0 %v2516_v1 }
  0x5d   :  { %2288 = vmatpush3.xpose.msk.msra.mxu1 %vm69_vm0, %v2039_v29 }
  0x5e   :  { %2289 = vmatprep.subr.mxu1 %v2516_v1 }
  0x5f   :  { %2279 = vmatpush3.xpose.msk.msra.mxu0 %vm69_vm0, %v2029_v30 }
  0x60   :  { %2280 = vmatprep.subr.mxu0 %v2516_v1 }
  0x61   :  { %2290 = vmatpush3.xpose.msk.msra.mxu1 %vm69_vm0, %v2038_v31 }
  0x62   :  { %2291 = vmatprep.subr.mxu1 %v2516_v1 }
  0x63   :  { %2281 = vmatpush3.xpose.msk.msra.mxu0 %vm69_vm0, %v2028_v32 }
  0x64   :  { %2296 = vmatprep.subr.mxu0 %v2516_v1 }
  0x65   :  { %2292 = vmatpush3.xpose.msk.msra.mxu1 %vm69_vm0, %v2037_v33 }
  0x66   :  { %2283 = vmatmul.mubr.msk.f32.vlgmr.msra.gmra.mxu0 %vm69_vm0, %v2518_v10  ;;  %2307 = vmatprep.subr.mxu1 %v2516_v1 }
  0x67   :  { %2297 = vmatpush3.xpose.msk.msra.mxu0 %vm69_vm0, %v2049_v34  ;;  %2304 = vmatprep.mubr.msk.f32.mxu0 %vm2517_vm1, %v2516_v1  ;;  %v2965_v34 = vmov 0.0  }
  0x68   :  { %2298 = vmatprep.subr.mxu0 %v2516_v1  ;;  %2294 = vmatmul.mubr.msk.f32.vlgmr.msra.gmra.mxu1 %vm69_vm0, %v2518_v10 }
  0x69   :  { %2308 = vmatpush3.xpose.msk.msra.mxu1 %vm69_vm0, %v2058_v35  ;;  %2315 = vmatprep.mubr.msk.f32.mxu1 %vm2517_vm1, %v2516_v1 }
  0x6a   :  { %2309 = vmatprep.subr.mxu1 %v2516_v1 }
  0x6b   :  { %2299 = vmatpush3.xpose.msk.msra.mxu0 %vm69_vm0, %v2048_v36 }
  0x6c   :  { %2300 = vmatprep.subr.mxu0 %v2516_v1 }
  0x6d   :  { %2310 = vmatpush3.xpose.msk.msra.mxu1 %vm69_vm0, %v2057_v37 }
  0x6e   :  { %2311 = vmatprep.subr.mxu1 %v2516_v1 }
  0x6f   :  { %2301 = vmatpush3.xpose.msk.msra.mxu0 %vm69_vm0, %v2047_v38 }
  0x70   :  { %2302 = vmatprep.subr.mxu0 %v2516_v1 }
  0x71   :  { %2312 = vmatpush3.xpose.msk.msra.mxu1 %vm69_vm0, %v2056_v39 }
  0x72   :  { %2313 = vmatprep.subr.mxu1 %v2516_v1 }
  0x73   :  { %2303 = vmatpush3.xpose.msk.msra.mxu0 %vm69_vm0, %v2046_v40 }
  0x74   :  { %2318 = vmatprep.subr.mxu0 %v2516_v1 }
  0x75   :  { %2314 = vmatpush3.xpose.msk.msra.mxu1 %vm69_vm0, %v2055_v41 }
  0x76   :  { %2305 = vmatmul.mubr.msk.f32.vlgmr.msra.gmra.mxu0 %vm69_vm0, %v2518_v10  ;;  %2329 = vmatprep.subr.mxu1 %v2516_v1 }
  0x77   :  { %2319 = vmatpush3.xpose.msk.msra.mxu0 %vm69_vm0, %v2067_v42  ;;  %2326 = vmatprep.mubr.msk.f32.mxu0 %vm2517_vm1, %v2516_v1 }
  0x78   :  { %2320 = vmatprep.subr.mxu0 %v2516_v1  ;;  %2316 = vmatmul.mubr.msk.f32.vlgmr.msra.gmra.mxu1 %vm69_vm0, %v2518_v10 }
  0x79   :  { %2330 = vmatpush3.xpose.msk.msra.mxu1 %vm69_vm0, %v2076_v43  ;;  %2337 = vmatprep.mubr.msk.f32.mxu1 %vm2517_vm1, %v2516_v1 }
  0x7a   :  { %2331 = vmatprep.subr.mxu1 %v2516_v1 }
  0x7b   :  { %2321 = vmatpush3.xpose.msk.msra.mxu0 %vm69_vm0, %v2066_v44 }
  0x7c   :  { %2322 = vmatprep.subr.mxu0 %v2516_v1 }
  0x7d   :  { %2332 = vmatpush3.xpose.msk.msra.mxu1 %vm69_vm0, %v2075_v45 }
  0x7e   :  { %2333 = vmatprep.subr.mxu1 %v2516_v1 }
  0x7f   :  { %2323 = vmatpush3.xpose.msk.msra.mxu0 %vm69_vm0, %v2065_v46 }
  0x80   :  { %2324 = vmatprep.subr.mxu0 %v2516_v1 }
  0x81   :  { %2334 = vmatpush3.xpose.msk.msra.mxu1 %vm69_vm0, %v2074_v47 }
  0x82   :  { %2335 = vmatprep.subr.mxu1 %v2516_v1 }
  0x83   :  { %2325 = vmatpush3.xpose.msk.msra.mxu0 %vm69_vm0, %v2064_v48 }
  0x84   :  { %2340 = vmatprep.subr.mxu0 %v2516_v1 }
  0x85   :  { %2336 = vmatpush3.xpose.msk.msra.mxu1 %vm69_vm0, %v2073_v49 }
  0x86   :  { %2327 = vmatmul.mubr.msk.f32.vlgmr.msra.gmra.mxu0 %vm69_vm0, %v2518_v10  ;;  %2351 = vmatprep.subr.mxu1 %v2516_v1 }
  0x87   :  { %2341 = vmatpush3.xpose.msk.msra.mxu0 %vm69_vm0, %v2085_v50  ;;  %2348 = vmatprep.mubr.msk.f32.mxu0 %vm2517_vm1, %v2516_v1 }
  0x88   :  { %2342 = vmatprep.subr.mxu0 %v2516_v1  ;;  %2338 = vmatmul.mubr.msk.f32.vlgmr.msra.gmra.mxu1 %vm69_vm0, %v2518_v10 }
  0x89   :  { %2352 = vmatpush3.xpose.msk.msra.mxu1 %vm69_vm0, %v2094_v51  ;;  %2359 = vmatprep.mubr.msk.f32.mxu1 %vm2517_vm1, %v2516_v1 }
  0x8a   :  { %2353 = vmatprep.subr.mxu1 %v2516_v1 }
  0x8b   :  { %2343 = vmatpush3.xpose.msk.msra.mxu0 %vm69_vm0, %v2084_v52 }
  0x8c   :  { %2344 = vmatprep.subr.mxu0 %v2516_v1 }
  0x8d   :  { %2354 = vmatpush3.xpose.msk.msra.mxu1 %vm69_vm0, %v2093_v53 }
  0x8e   :  { %2355 = vmatprep.subr.mxu1 %v2516_v1 }
  0x8f   :  { %2345 = vmatpush3.xpose.msk.msra.mxu0 %vm69_vm0, %v2083_v54 }
  0x90   :  { %2346 = vmatprep.subr.mxu0 %v2516_v1 }
  0x91   :  { %2356 = vmatpush3.xpose.msk.msra.mxu1 %vm69_vm0, %v2092_v55 }
  0x92   :  { %2357 = vmatprep.subr.mxu1 %v2516_v1 }
  0x93   :  { %2347 = vmatpush3.xpose.msk.msra.mxu0 %vm69_vm0, %v2082_v56 }
  0x94   :  { %2362 = vmatprep.subr.mxu0 %v2516_v1 }
  0x95   :  { %2358 = vmatpush3.xpose.msk.msra.mxu1 %vm69_vm0, %v2091_v57 }
  0x96   :  { %2349 = vmatmul.mubr.msk.f32.vlgmr.msra.gmra.mxu0 %vm69_vm0, %v2518_v10 }
  0x97   :  { %2363 = vmatpush3.xpose.msk.msra.mxu0 %vm69_vm0, %v2103_v58  ;;  %2370 = vmatprep.mubr.msk.f32.mxu0 %vm2517_vm1, %v2516_v1 }
  0x98   :  { %2364 = vmatprep.subr.mxu0 %v2516_v1  ;;  %2360 = vmatmul.mubr.msk.f32.vlgmr.msra.gmra.mxu1 %vm69_vm0, %v2518_v10 }
  0x9b   :  { %2365 = vmatpush3.xpose.msk.msra.mxu0 %vm69_vm0, %v2102_v59 }
  0x9c   :  { %2366 = vmatprep.subr.mxu0 %v2516_v1 }
  0x9f   :  { %2367 = vmatpush3.xpose.msk.msra.mxu0 %vm69_vm0, %v2101_v60 }
  0xa0   :  { %2368 = vmatprep.subr.mxu0 %v2516_v1  ;;  %v1394_v1 = vld [vmem:[%s3039_s3] sm:$0x1f]  }
  0xa3   :  { %2369 = vmatpush3.xpose.msk.msra.mxu0 %vm69_vm0, %v2100_v61 }
  0xa6   :  { %2371 = vmatmul.mubr.msk.f32.vlgmr.msra.gmra.mxu0 %vm69_vm0, %v2518_v10 }
  0xf6   :  { %v151_v3 = vpop.f32.mrf.mxu0 }
  0xf7   :  { %156 = vst.msk [vmem:[#allocation2] sm:$0x1] %vm155_vm2, %v151_v3  ;;  %v240_v4 = vpop.f32.mrf.mxu1 }
  0xf8   :  { %v2218_v5 = vpop.f32.mrf.mxu0  ;;  %244 = vst.msk [vmem:[#allocation2 + $0x1] sm:$0x1] %vm155_vm2, %v240_v4 }
  0xf9   :  { %v2229_v6 = vpop.f32.mrf.mxu1 }
 0x106   :  { %v328_v7 = vpop.f32.mrf.mxu0 }
 0x107   :  { %332 = vst.msk [vmem:[#allocation2 + $0x2] sm:$0x1] %vm155_vm2, %v328_v7 }
 0x108   :  { %v2240_v8 = vpop.f32.mrf.mxu0  ;;  %v416_v9 = vpop.f32.mrf.mxu1 }
 0x109   :  { %420 = vst.msk [vmem:[#allocation2 + $0x3] sm:$0x1] %vm155_vm2, %v416_v9 }
 0x10a   :  { %v2251_v10 = vpop.f32.mrf.mxu1 }
 0x116   :  { %v504_v11 = vpop.f32.mrf.mxu0 }
 0x117   :  { %508 = vst.msk [vmem:[#allocation2 + $0x4] sm:$0x1] %vm155_vm2, %v504_v11 }
 0x118   :  { %v2262_v12 = vpop.f32.mrf.mxu0  ;;  %v591_v13 = vpop.f32.mrf.mxu1 }
 0x119   :  { %595 = vst.msk [vmem:[#allocation3] sm:$0x1] %vm155_vm2, %v591_v13 }
 0x11a   :  { %v2273_v14 = vpop.f32.mrf.mxu1 }
 0x11e   :  { %v2954_v15 = vld [vmem:[#allocation2] sm:$0x1f] }
 0x126   :  { %v679_v16 = vpop.f32.mrf.mxu0 }
 0x127   :  { %683 = vst.msk [vmem:[#allocation3 + $0x1] sm:$0x1] %vm155_vm2, %v679_v16 }
 0x128   :  { %v2284_v17 = vpop.f32.mrf.mxu0  ;;  %v767_v18 = vpop.f32.mrf.mxu1 }
 0x129   :  { %771 = vst.msk [vmem:[#allocation3 + $0x2] sm:$0x1] %vm155_vm2, %v767_v18 }
 0x12a   :  { %v2295_v19 = vpop.f32.mrf.mxu1 }
 0x136   :  { %v855_v20 = vpop.f32.mrf.mxu0 }
 0x137   :  { %859 = vst.msk [vmem:[#allocation3 + $0x3] sm:$0x1] %vm155_vm2, %v855_v20 }
 0x138   :  { %v2306_v21 = vpop.f32.mrf.mxu0  ;;  %v943_v22 = vpop.f32.mrf.mxu1 }
 0x139   :  { %947 = vst.msk [vmem:[#allocation3 + $0x4] sm:$0x1] %vm155_vm2, %v943_v22 }
 0x13a   :  { %v2317_v23 = vpop.f32.mrf.mxu1 }
 0x146   :  { %v1031_v24 = vpop.f32.mrf.mxu0 }
 0x147   :  { %1035 = vst.msk [vmem:[#allocation3 + $0x5] sm:$0x1] %vm155_vm2, %v1031_v24 }
 0x148   :  { %v2328_v25 = vpop.f32.mrf.mxu0  ;;  %v1119_v26 = vpop.f32.mrf.mxu1 }
 0x149   :  { %1123 = vst.msk [vmem:[#allocation3 + $0x6] sm:$0x1] %vm155_vm2, %v1119_v26 }
 0x14a   :  { %v2339_v27 = vpop.f32.mrf.mxu1 }
 0x156   :  { %v1207_v28 = vpop.f32.mrf.mxu0 }
 0x157   :  { %1211 = vst.msk [vmem:[#allocation3 + $0x7] sm:$0x1] %vm155_vm2, %v1207_v28 }
 0x158   :  { %v2350_v29 = vpop.f32.mrf.mxu0  ;;  %v1295_v30 = vpop.f32.mrf.mxu1 }
 0x159   :  { %1299 = vst.msk [vmem:[#allocation3 + $0x8] sm:$0x1] %vm155_vm2, %v1295_v30 }
 0x15a   :  { %v2361_v31 = vpop.f32.mrf.mxu1 }
 0x166   :  { %v1383_v32 = vpop.f32.mrf.mxu0 }
 0x167   :  { %1387 = vst.msk [vmem:[#allocation3 + $0x9] sm:$0x1] %vm155_vm2, %v1383_v32 }
 0x168   :  { %v2372_v33 = vpop.f32.mrf.mxu0 }
 0x169 LB: > { %vm1430_vm3 = vcmask 1044480   ;;  %v2519_v35 = vmov 0.0   ;;  %vm2520_vm4 = vmmov 0   ;;  %s2109_s2 = sshll.u32 %s2511_s1, 2  ;;  %vm1403_vm5 = vcmp.eq.s32.totalorder %v2941_v0, 0  ;;  %s1577_s20 = sld [smem:[#allocation6 + %s2511_s1]]  ;;  %s2511_s1 = sphi %s2969_s1, %s1400_s1   ;;  %v2507_v1 = vphi %v1394_v1, %v3045_v1   ;;  %v2503_v34 = vphi %v2965_v34, %v1819_v34  }
 0x16a   : > { %2373 = vmatprep.subr.mxu0 %v2519_v35  ;;  %2375 = vmatprep.mubr.msk.f32.mxu0 %vm2520_vm4, %v2519_v35  ;;  %s1405_s3 = sld [smem:[#allocation4 + %s2109_s2]]  ;;  %s1409_s15 = sadd.s32 1, %s2109_s2  ;;  %vm1408_vm6 = vcmp.eq.s32.totalorder %v2941_v0, 1  ;;  %vm1413_vm7 = vcmp.eq.s32.totalorder %v2941_v0, 2  ;;  %vm1418_vm8 = vcmp.eq.s32.totalorder %v2941_v0, 3  ;;  %vm1426_vm9 = vcmask 39936  }
 0x16b   : > { %2374 = vmatpush3.msk.msra.mxu0 %vm1430_vm3, %v2954_v15  ;;  %2378 = vmatprep.subr.mxu1 %v2519_v35  ;;  %s1410_s16 = sld [smem:[#allocation4 + %s1409_s15]]  ;;  %s1414_s17 = sadd.s32 2, %s2109_s2  ;;  %v1591_v45 = vmul.f32 %v2507_v1, %v2507_v1  ;;  %vm1592_vm11 = vcmask 258048   ;;  %vm1584_vm12 = vcmask 257024   ;;  %vm1599_vm13 = vcmask 261120  }
 0x16c   : > { %2379 = vmatpush3.msk.msra.mxu1 %vm1430_vm3, %v2939_v63  ;;  %2380 = vmatprep.mubr.msk.f32.mxu1 %vm2520_vm4, %v2519_v35  ;;  %s1415_s18 = sld [smem:[#allocation4 + %s1414_s17]]  ;;  %s1419_s0 = sadd.s32 3, %s2109_s2  ;;  %vm1730_vm14 = vcmask 1043456   ;;  %vm1679_vm15 = vcmask 35840   ;;  %vm1726_vm1 = vcmask 31744  }
 0x16d   : > { %2383 = vmatprep.subr.mxu0 %v2519_v35  ;;  %2388 = vmatprep.subr.mxu1 %v2519_v35  ;;  %s1420_s19 = sld [smem:[#allocation4 + %s1419_s0]]  ;;  %v1593_v46 = vsel %vm1592_vm11, %v1591_v45, 0.0  ;;  %p1812_p1 = scmp.eq.s32.totalorder %s2511_s1, 0  ;;  %v1810_v29 = vmul.f32 0.001, %v2507_v1 }
 0x16e   : > { %1594 = vadd.xlane.f32.xlu0 %v1593_v46  ;;  %s1580_s7 = sld [smem:[#allocation8 + %s2511_s1]]  ;;  %s1400_s1 = sadd.s32 1, %s2511_s1  }
 0x16f   : > { %v1578_v13 = vstv %s1577_s20  ;;  %s1816_s21 = scalar_select %p1812_p1, 1, 0 }
 0x170   : > { %v1406_v36 = vstv %s1405_s3  ;;  %vm1579_vm0 = vcmp.lt.s32.totalorder %v2941_v0, %v1578_v13  ;;  %p1397_p2 = scmp.ge.s32.totalorder %s1400_s1, 200  }
 0x171   : > { %v1407_v37 = vsel %vm1403_vm5, %v1406_v36, 0  ;;  %v1411_v38 = vstv %s1410_s16  ;;  %v1817_v32 = vstv %s1816_s21  ;;  %vm1830_vm3 = vcmask (%p1397_p2), 254976   ;;  %v1955_v13 = vld [vmem:[%s3040_s4] sm:$0xff] (%p1397_p2) }
 0x172   : > { %v1412_v39 = vsel %vm1408_vm6, %v1411_v38, %v1407_v37  ;;  %v1416_v40 = vstv %s1415_s18  ;;  %vm1818_vm2 = vcmp.eq.s32.totalorder %v1817_v32, 1 }
 0x173   : > { %v1417_v41 = vsel %vm1413_vm7, %v1416_v40, %v1412_v39  ;;  %v1421_v42 = vstv %s1420_s19  ;;  %vm1963_vm7 = vcmask (%p1397_p2), 1024  }
 0x174   : > { %v1422_v43 = vsel %vm1418_vm8, %v1421_v42, %v1417_v41  ;;  %v1581_v16 = vstv %s1580_s7  ;;  %v1822_v41 = vld [vmem:[#allocation3] sm:$0xff] (%p1397_p2)  ;;  %v1823_v42 = vld [vmem:[#allocation3 + $0x8] sm:$0x3] (%p1397_p2) }
 0x175   : > { %vm1423_vm10 = vcmp.eq.s32.totalorder %v2943_v2, %v1422_v43  ;;  %v1582_v19 = vsel %vm1579_vm0, %v1581_v16, 0.0  ;;  %v1824_v43 = vmul.f32 (%p1397_p2), %v1822_v41, %v1822_v41  ;;  %v2521_v16 = vmov (%p1397_p2), 0  }
 0x176   : > { %v2110_v44 = vsel %vm1423_vm10, 1.0, %v2519_v35 }
 0x177   : > { %2376 = vmatmul.mubr.msk.f32.vlgmr.msra.gmra.mxu0 %vm1426_vm9, %v2110_v44  ;;  %2381 = vmatmul.mubr.msk.f32.vlgmr.msra.gmra.mxu1 %vm1426_vm9, %v2110_v44  ;;  %v1825_v44 = vmul.f32 (%p1397_p2), %v1823_v42, %v1823_v42  ;;  %v1827_v46 = vsel (%p1397_p2), %vm1599_vm13, %v1824_v43, 0.0 }
 0x178   : > { %2385 = vmatprep.mubr.msk.f32.mxu0 %vm2520_vm4, %v2519_v35  ;;  %2390 = vmatprep.mubr.msk.f32.mxu1 %vm2520_vm4, %v2519_v35  ;;  %v1813_v35 = vmul.f32 0.9, %v2503_v34  ;;  %vm1938_vm4 = vcmask (%p1397_p2), 33792  }
 0x1f7   : > { %v1595_v51 = vpop.xlane.xlu0 %1594 }
 0x1f8   : > { %v1596_v52 = vmax.f32 %v1595_v51, 1e-24 }
 0x1fa   : > { %2435 = vrsqrt.f32 %v1596_v52 }
 0x207   : > { %v2436_v53 = vpop.eup %2435 }
 0x208   : > { %v1598_v54 = vmul.f32 %v2507_v1, %v2436_v53 }
 0x20a   : > { %2384 = vmatpush3.xpose.msk.msra.mxu0 %vm1599_vm13, %v1598_v54 }
 0x237   : > { %v1500_v47 = vpop.f32.mrf.mxu0  ;;  %v1573_v55 = vpop.f32.mrf.mxu1 }
 0x238   : > { %v1583_v48 = vmul.f32 %v1500_v47, %v1500_v47  ;;  %v1676_v61 = vmul.f32 0.4, %v1573_v55 }
 0x239   : > { %v2377_v49 = vpop.f32.mrf.mxu0  ;;  %v2382_v56 = vpop.f32.mrf.mxu1 }
 0x23a   : > { %v1585_v50 = vsel %vm1584_vm12, %v1583_v48, 0.0 }
 0x23b   : > { %1586 = vadd.xlane.f32.xlu0 %v1585_v50 }
 0x2c4   : > { %v1587_v57 = vpop.xlane.xlu0 %1586 }
 0x2c5   : > { %v1588_v58 = vmax.f32 %v1587_v57, 1e-24 }
 0x2c7   : > { %2437 = vrsqrt.f32 %v1588_v58 }
 0x2d4   : > { %v2438_v59 = vpop.eup %2437 }
 0x2d5   : > { %v1590_v60 = vmul.f32 %v2438_v59, %v1500_v47 }
 0x2d7   : > { %2386 = vmatmul.mubr.msk.f32.vlgmr.msra.gmra.mxu0 %vm1599_vm13, %v1590_v60  ;;  %2389 = vmatpush3.msk.msra.mxu1 %vm1730_vm14, %v1590_v60 }
 0x397   : > { %v1672_v62 = vpop.f32.mrf.mxu0 }
 0x398   : > { %v1677_v3 = vsub.f32 %v1672_v62, %v1676_v61  ;;  %v1942_v61 = vcvt.s32.f32 (%p1397_p2), %v2943_v2 }
 0x399   : > { %v2387_v4 = vpop.f32.mrf.mxu0 }
 0x39a   : > { %v1678_v5 = vmul.f32 30.0, %v1677_v3 }
 0x39c   : > { %v1680_v6 = vsel %vm1679_vm15, %v1678_v5, -inf }
 0x39d   : > { %1681 = vmax.xlane.f32.xlu1 %v1680_v6 }
 0x426   : > { %v1682_v7 = vpop.xlane.xlu1 %1681 }
 0x427   : > { %v1683_v8 = vsub.f32 %v1678_v5, %v1682_v7 }
 0x429   : > { %v1684_v9 = vmul.f32 1.442695, %v1683_v8 }
 0x42b   : > { %2439 = vpow2.f32 %v1684_v9 }
 0x438   : > { %v2440_v10 = vpop.eup %2439 }
 0x439   : > { %v1686_v11 = vsel %vm1679_vm15, %v2440_v10, 0.0 }
 0x43a   : > { %1687 = vadd.xlane.f32.xlu1 %v1686_v11 }
 0x4c3   : > { %v1688_v12 = vpop.xlane.xlu1 %1687 }
 0x4c4   : > { %2441 = vrcp.f32 %v1688_v12 }
 0x4d1   : > { %v2442_v14 = vpop.eup %2441 }
 0x4d2   : > { %v1690_v17 = vmul.f32 %v2442_v14, %v2440_v10  ;;  %v1956_v10 = vld [vmem:[%s3040_s4 + $0x8] sm:$0x3] (%p1397_p2) }
 0x4d4   : > { %v1691_v18 = vsub.f32 %v1690_v17, %v1573_v55 }
 0x4d6   : > { %v1692_v20 = vmul.f32 30.0, %v1691_v18 }
 0x4d8   : > { %v1693_v21 = vmul.f32 %v1692_v20, %v1582_v19 }
 0x4da   : > { %1694 = vxpose.xlu0.b32.start.end [1/1] (short) (narrow) %v1693_v21, 8 }
 0x556   : > { %v1710_v22 = vpop.trf.xlu0 }
 0x557   : > { %2391 = vmatmul.mubr.msk.f32.vlgmr.msra.gmra.mxu1 %vm1726_vm1, %v1710_v22 }
 0x617   : > { %v1799_v23 = vpop.f32.mrf.mxu1 }
 0x618   : > { %v1803_v24 = vmul.f32 %v1799_v23, %v1598_v54 }
 0x619   : > { %v2392_v25 = vpop.f32.mrf.mxu1 }
 0x61a   : > { %v1804_v26 = vsel %vm1592_vm11, %v1803_v24, 0.0 }
 0x61b   : > { %1805 = vadd.xlane.f32.xlu1 %v1804_v26 }
 0x6a4   : > { %v1806_v27 = vpop.xlane.xlu1 %1805 }
 0x6a5   : > { %v1807_v28 = vmul.f32 %v1806_v27, %v1598_v54 }
 0x6a7   : > { %v1808_v30 = vsub.f32 %v1799_v23, %v1807_v28 }
 0x6a9   : > { %v1809_v31 = vmul.f32 %v2436_v53, %v1808_v30 }
 0x6ab   : > { %v1811_v33 = vadd.f32 %v1810_v29, %v1809_v31 }
 0x6ad   : > { %v1814_v36 = vmul.f32 0.1, %v1811_v33 }
 0x6af   : > { %v1815_v37 = vadd.f32 %v1814_v36, %v1813_v35 }
 0x6b1   : > { %v1819_v34 = vsel %vm1818_vm2, %v1811_v33, %v1815_v37  }
 0x6b2   : > { %v1820_v38 = vmul.f32 0.01, %v1819_v34  ;;  %1399 = sbr.rel (!%p1397_p2) target bundleno = 361 (0x169), region = 84 }
 0x6b4   : > { %v1821_v39 = vsub.f32 %v2507_v1, %v1820_v38  }
 0x6b6   : > { %v3045_v1 = vmov %v1821_v39  ;;  %v1840_v40 = vmul.f32 (%p1397_p2), %v1821_v39, %v1821_v39 }
 0x6b7   :  { %v1831_v1 = vsel %vm1830_vm3, %v1825_v44, 0.0 }
 0x6b8   :  { %v1842_v45 = vsel %vm1592_vm11, %v1840_v40, 0.0  ;;  %1832 = vadd.xlane.f32.xlu1 %v1831_v1 }
 0x6b9   :  { %1843 = vadd.xlane.f32.xlu0 %v1842_v45 }
 0x6bd   :  { %1828 = vadd.xlane.f32.xlu0 %v1827_v46 }
 0x741   :  { %v1833_v49 = vpop.xlane.xlu1 %1832 }
 0x742   :  { %v1844_v47 = vpop.xlane.xlu0 %1843  ;;  %v1835_v50 = vmax.f32 %v1833_v49, 1e-24 }
 0x743   :  { %v1845_v48 = vmax.f32 %v1844_v47, 1e-24 }
 0x745   :  { %2443 = vrsqrt.f32 %v1845_v48 }
 0x746   :  { %v1829_v51 = vpop.xlane.xlu0 %1828  ;;  %2445 = vrsqrt.f32 %v1835_v50 }
 0x747   :  { %v1834_v63 = vmax.f32 %v1829_v51, 1e-24 }
 0x749   :  { %2447 = vrsqrt.f32 %v1834_v63 }
 0x752   :  { %v2444_v0 = vpop.eup %2443 }
 0x753   :  { %v2446_v15 = vpop.eup %2445  ;;  %v1847_v34 = vmul.f32 %v2444_v0, %v1821_v39 }
 0x754   :  { %v1839_v53 = vmul.f32 %v2446_v15, %v1823_v42 }
 0x755   :  { %2393 = vmatprep.subr.msk.mxu0 %vm1599_vm13, %v1847_v34 }
 0x756   :  { %v2448_v52 = vpop.eup %2447  ;;  %2394 = vmatpush3.xpose.msk.msra.mxu0 %vm1599_vm13, %v1847_v34 }
 0x757   :  { %v1838_v54 = vmul.f32 %v2448_v52, %v1822_v41 }
 0x759   :  { %2395 = vmatprep.mubr.msk.f32.mxu0 %vm1599_vm13, %v1838_v54 }
 0x75a   :  { %2396 = vmatmul.mubr.msk.f32.vlgmr.msra.gmra.mxu0 %vm1599_vm13, %v1839_v53 }
 0x81a   :  { %v2397_v55 = vpop.f32.mrf.mxu0 }
 0x81b   :  { %v1933_v56 = vmul.f32 30.0, %v2397_v55 }
 0x81c   :  { %v1923_v57 = vpop.f32.mrf.mxu0 }
 0x81d   :  { %v1932_v58 = vmul.f32 30.0, %v1923_v57  ;;  %v1939_v59 = vsel %vm1938_vm4, %v1933_v56, -inf }
 0x81e   :  { %1940 = vmax.xlane.f32.xlu0 %v1939_v59 }
 0x81f   :  { %v1935_v60 = vsel %vm1426_vm9, %v1932_v58, -inf }
 0x820   :  { %1936 = vmax.xlane.f32.xlu1 %v1935_v60 }
 0x8a7   :  { %v1941_v62 = vpop.xlane.xlu0 %1940 }
 0x8a8   :  { %vm1944_vm5 = vcmp.eq.f32.partialorder %v1933_v56, %v1941_v62 }
 0x8a9   :  { %v1937_v3 = vpop.xlane.xlu1 %1936  ;;  %v1946_v4 = vsel %vm1944_vm5, %v1942_v61, 5.0 }
 0x8aa   :  { %vm1943_vm6 = vcmp.eq.f32.partialorder %v1932_v58, %v1937_v3  ;;  %v1950_v5 = vsel %vm1938_vm4, %v1946_v4, inf }
 0x8ab   :  { %1951 = vmin.xlane.f32.xlu0 %v1950_v5  ;;  %v1945_v6 = vsel %vm1943_vm6, %v1942_v61, 5.0 }
 0x8ac   :  { %v1947_v7 = vsel %vm1426_vm9, %v1945_v6, inf  ;;  %vm1961_vm9 = vcmask 7168  }
 0x8ad   :  { %1948 = vmin.xlane.f32.xlu1 %v1947_v7 }
 0x934   :  { %v1952_v8 = vpop.xlane.xlu0 %1951 }
 0x935   :  { %v2400_v9 = vtrunc.f32 %v1952_v8 }
 0x936   :  { %v1949_v11 = vpop.xlane.xlu1 %1948 }
 0x937   :  { %v2401_v12 = vcvt.f32.s32 %v2400_v9  ;;  %v2398_v2 = vtrunc.f32 %v1949_v11 }
 0x939   :  { %vm1958_vm8 = vcmp.eq.s32.totalorder %v2401_v12, %v1956_v10  ;;  %v2399_v14 = vcvt.f32.s32 %v2398_v2 }
 0x93a   :  { %v1960_v17 = vsel %vm1958_vm8, 1, %v2521_v16 }
 0x93b   :  { %1964 = vst.msk [vmem:[%s3044_s8 + $0x8] sm:$0x3] %vm1963_vm7, %v1960_v17  ;;  %vm1957_vm10 = vcmp.eq.s32.totalorder %v2399_v14, %v1955_v13 }
 0x93c   :  { %v1959_v18 = vsel %vm1957_vm10, 1, %v2521_v16 }
 0x93d   :  { %1962 = vst.msk [vmem:[%s3044_s8] sm:$0xff] %vm1961_vm9, %v1959_v18 }
 0x93e   :  { %1969 = vsyncpa [#allocation5], 1 }
 0x93f   :  { %1970 = vsyncpa [#allocation7], 1 }

</bundles_post_ra>
